<compile_context>
chip_gen: v7x
topology: tpu7x:2x2x1
jax: 0.10.0
libtpu: 0.0.40
codegen_flags: <defaults>
</compile_context>

<pallas_src>
import functools

import jax
import jax.numpy as jnp
from jax import lax
from jax.experimental import pallas as pl
from jax.experimental.pallas import tpu as pltpu


def _round_up(x, m):
    return (x + m - 1) // m * m


# ---------------------------------------------------------------------------
# Fast path: whole (B, C, S) activation fits in VMEM -> one block, no
# accumulator / pl.when machinery.
# ---------------------------------------------------------------------------
def _pbsr_single_kernel(x_ref, p_ref, wT_ref, b_ref, scores_ref, bsr_ref, *, inv_s):
    fea_b = jnp.sum(x_ref[...].astype(jnp.float32), axis=-1) * inv_s          # (B, C)
    fea_e = jnp.dot(fea_b, p_ref[...], preferred_element_type=jnp.float32)    # (B, Cp)
    # sum of squared singular values of fea_e.T == ||fea_e||_F^2 (exact).
    bsr_ref[...] = jnp.sum(fea_e * fea_e).reshape(1, 1)
    scores_ref[...] = (jnp.dot(fea_e, wT_ref[...], preferred_element_type=jnp.float32)
                       + b_ref[...])


# ---------------------------------------------------------------------------
# Streaming path: grid = (batch_shard ["parallel"], spatial_tile ["arbitrary"]).
# Each shard owns B_blk batch rows, accumulates a (B_blk, C, 1) running spatial
# sum in VMEM scratch and finalizes its own scores rows + partial bsr.
# ---------------------------------------------------------------------------
def _pbsr_stream_kernel(x_ref, p_ref, wT_ref, b_ref, scores_ref, bsr_ref, acc_ref,
                        *, inv_s, rem):
    t = pl.program_id(1)
    last = pl.num_programs(1) - 1

    @pl.when(t == 0)
    def _():
        acc_ref[...] = jnp.zeros_like(acc_ref)

    # Stream x in its original dtype; upcast per tile inside the kernel.
    xt = x_ref[...].astype(jnp.float32)                       # (B_blk, C, tile_s)

    if rem == 0:
        # tile_s divides S exactly -> no masking anywhere.
        acc_ref[...] += jnp.sum(xt, axis=-1, keepdims=True)
    else:
        # Ragged tail: the last spatial tile reads `tile_s - rem` garbage lanes
        # past S; they MUST be masked (OOB block contents are unspecified).
        @pl.when(t < last)
        def _():
            acc_ref[...] += jnp.sum(xt, axis=-1, keepdims=True)

        @pl.when(t == last)
        def _():
            lane = lax.broadcasted_iota(jnp.int32, xt.shape, dimension=2)
            acc_ref[...] += jnp.sum(jnp.where(lane < rem, xt, 0.0),
                                    axis=-1, keepdims=True)

    @pl.when(t == last)
    def _():
        # Apply the 1/S scale once; then the two tiny finalize matmuls.
        fea_b = acc_ref[...][:, :, 0] * inv_s                                  # (B_blk, C)
        fea_e = jnp.dot(fea_b, p_ref[...], preferred_element_type=jnp.float32)  # (B_blk, Cp)
        # Per-shard partial bsr (summed over shards in the wrapper).
        bsr_ref[...] = jnp.sum(fea_e * fea_e).reshape(1, 1, 1)
        scores_ref[...] = (jnp.dot(fea_e, wT_ref[...],
                                   preferred_element_type=jnp.float32)
                           + b_ref[...])[None]                                  # (1, B_blk, n_way)


def pbsr_share_forward(x, P_matrix, cls_weight, cls_bias, *,
                       tile_s=None, force_stream=False):
    """x: (B, C, D, H, W). Returns (scores (B, n_way), bsr scalar)."""
    B, C, D, H, W = x.shape
    S = D * H * W
    n_way = cls_weight.shape[0]
    Cm1 = P_matrix.shape[1]
    itemsize = jnp.dtype(x.dtype).itemsize

    # --- layout hygiene: zero-pad the tiny C-1 contraction dim (e.g. 31 -> 32).
    # Zero columns contribute nothing to scores or ||fea_e||^2 (exact).
    Cp = _round_up(Cm1, 8)
    P_pad = jnp.pad(P_matrix.astype(jnp.float32), ((0, 0), (0, Cp - Cm1)))
    wT_pad = jnp.pad(cls_weight.T.astype(jnp.float32), ((0, Cp - Cm1), (0, 0)))
    b2 = cls_bias.astype(jnp.float32).reshape(1, n_way)

    # Free view (contiguous dims merge); NO pad and NO dtype copy of x in HBM.
    x_flat = x.reshape(B, C, S)

    # --- generation-aware VMEM budget.
    try:
        vmem_cap = int(pltpu.get_tpu_info().vmem_capacity_bytes)
    except Exception:
        vmem_cap = 64 * 1024 * 1024            # conservative (v7x-sized) fallback
    x_block_budget = max(4 * 1024 * 1024, vmem_cap // 8)    # 8 MiB v7x / 16 MiB v5e,v6e
    vmem_limit = min(vmem_cap // 2, 64 * 1024 * 1024)       # double-buffer fits easily

    inv_s = 1.0 / float(S)

    # ---------------- fast path: whole activation in one VMEM block ----------
    if tile_s is None and not force_stream and B * C * S * itemsize <= x_block_budget:
        cost = pl.CostEstimate(
            flops=int(2 * B * C * S + 2 * B * C * Cp + 2 * B * Cp * n_way),
            transcendentals=0,
            bytes_accessed=int(B * C * S * itemsize
                               + (P_pad.size + wT_pad.size + b2.size + B * n_way + 1) * 4),
        )
        scores, bsr = pl.pallas_call(
            functools.partial(_pbsr_single_kernel, inv_s=inv_s),
            out_shape=(jax.ShapeDtypeStruct((B, n_way), jnp.float32),
                       jax.ShapeDtypeStruct((1, 1), jnp.float32)),
            grid_spec=pltpu.PrefetchScalarGridSpec(
                num_scalar_prefetch=0,
                grid=(1,),
                in_specs=[
                    pl.BlockSpec((B, C, S), lambda i: (0, 0, 0)),
                    pl.BlockSpec((C, Cp), lambda i: (0, 0)),
                    pl.BlockSpec((Cp, n_way), lambda i: (0, 0)),
                    pl.BlockSpec((1, n_way), lambda i: (0, 0)),
                ],
                out_specs=(
                    pl.BlockSpec((B, n_way), lambda i: (0, 0)),
                    pl.BlockSpec((1, 1), lambda i: (0, 0)),
                ),
            ),
            compiler_params=pltpu.CompilerParams(
                dimension_semantics=("arbitrary",),
                vmem_limit_bytes=vmem_limit,
            ),
            cost_estimate=cost,
        )(x_flat, P_pad, wT_pad, b2)
        return scores, bsr[0, 0]

    # ---------------- streaming path -----------------------------------------
    # Batch shards -> "parallel" axis (uses both TensorCores on v7x; negligible
    # overhead on single-core chips). Scores decompose by batch row; bsr is a
    # per-shard partial summed in the wrapper.
    n_bshards = 2 if (B >= 2 and B % 2 == 0) else 1
    B_blk = B // n_bshards
    # TODO(synk): for odd B or B == 1, add an S-split (two halves of the spatial
    # stream with per-shard partial sums) to still use both TCs on v7x.

    if tile_s is None:
        tile_s = x_block_budget // (B_blk * C * itemsize)
    tile_s = max(128, (int(tile_s) // 128) * 128)
    tile_s = min(tile_s, _round_up(S, 128))
    num_tiles = pl.cdiv(S, tile_s)
    rem = S % tile_s                    # 0 => no in-kernel masking is traced

    cost = pl.CostEstimate(
        flops=int(2 * B * C * S + 2 * B * C * Cp + 2 * B * Cp * n_way),
        transcendentals=0,
        bytes_accessed=int(B * C * S * itemsize
                           + (P_pad.size + wT_pad.size + b2.size
                              + B * n_way + n_bshards) * 4),
    )

    kernel = functools.partial(_pbsr_stream_kernel, inv_s=inv_s, rem=rem)

    scores_sh, bsr_sh = pl.pallas_call(
        kernel,
        out_shape=(
            jax.ShapeDtypeStruct((n_bshards, B_blk, n_way), jnp.float32),
            jax.ShapeDtypeStruct((n_bshards, 1, 1), jnp.float32),
        ),
        grid_spec=pltpu.PrefetchScalarGridSpec(
            num_scalar_prefetch=0,
            grid=(n_bshards, num_tiles),
            in_specs=[
                pl.BlockSpec((B_blk, C, tile_s), lambda bs, t: (bs, 0, t)),  # streamed x
                pl.BlockSpec((C, Cp), lambda bs, t: (0, 0)),                 # P (resident)
                pl.BlockSpec((Cp, n_way), lambda bs, t: (0, 0)),             # W.T (resident)
                pl.BlockSpec((1, n_way), lambda bs, t: (0, 0)),              # bias (resident)
            ],
            out_specs=(
                pl.BlockSpec((1, B_blk, n_way), lambda bs, t: (bs, 0, 0)),   # per-shard scores
                pl.BlockSpec((1, 1, 1), lambda bs, t: (bs, 0, 0)),           # per-shard bsr
            ),
            scratch_shapes=[pltpu.VMEM((B_blk, C, 1), jnp.float32)],
        ),
        compiler_params=pltpu.CompilerParams(
            dimension_semantics=("parallel", "arbitrary"),
            vmem_limit_bytes=vmem_limit,
        ),
        cost_estimate=cost,
    )(x_flat, P_pad, wT_pad, b2)

    scores = scores_sh.reshape(B, n_way)          # shards are contiguous batch blocks
    bsr = jnp.sum(bsr_sh)                         # sum per-shard partials (tiny)
    return scores, bsr


if __name__ == "__main__":
    # Small shapes consistent with the module. S = 4*16*16 = 1024.
    B, feat_dim, D, H, W = 2, 32, 4, 16, 16
    n_way = 5

    key = jax.random.PRNGKey(0)
    kx, kp, kw = jax.random.split(key, 3)

    x = jax.random.normal(kx, (B, feat_dim, D, H, W), dtype=jnp.float32)
    P_matrix = jax.random.normal(kp, (feat_dim, feat_dim - 1), dtype=jnp.float32) * 0.1
    cls_weight = jax.random.normal(kw, (n_way, feat_dim - 1), dtype=jnp.float32) * 0.1
    cls_bias = jnp.zeros((n_way,), dtype=jnp.float32)   # bias.data.fill_(0)

    # Pure-JAX reference (bsr via explicit SVD to match torch.svd semantics).
    fea_b_ref = jnp.mean(x.reshape(B, feat_dim, -1), axis=-1)
    fea_e_ref = fea_b_ref @ P_matrix
    s_ref = jnp.linalg.svd(fea_e_ref.T, compute_uv=False)
    bsr_ref = jnp.sum(s_ref ** 2)
    scores_ref = fea_e_ref @ cls_weight.T + cls_bias

    # 1) Fast path (whole activation fits in VMEM -> single block kernel).
    scores_f, bsr_f = pbsr_share_forward(x, P_matrix, cls_weight, cls_bias)
    # 2) Streaming path forced: 2 batch shards x 4 spatial tiles of 256 lanes.
    scores_s, bsr_s = pbsr_share_forward(x, P_matrix, cls_weight, cls_bias,
                                         tile_s=256, force_stream=True)
    jax.block_until_ready((scores_f, bsr_f, scores_s, bsr_s))

    for sc, br in ((scores_f, bsr_f), (scores_s, bsr_s)):
        assert jnp.allclose(sc, scores_ref, atol=1e-4, rtol=1e-4)
        assert jnp.allclose(br, bsr_ref, atol=1e-3, rtol=1e-4)

    print("KERNEL_OK")
</pallas_src>

<mosaic_0001>
module attributes {stable_mosaic.version = 11 : i64} {
  func.func @_pbsr_single_kernel(%arg0: i32, %arg1: memref<2x32x1024xf32, #tpu.memory_space<vmem>>, %arg2: memref<32x32xf32, #tpu.memory_space<vmem>>, %arg3: memref<32x5xf32, #tpu.memory_space<vmem>>, %arg4: memref<1x5xf32, #tpu.memory_space<vmem>>, %arg5: memref<2x5xf32, #tpu.memory_space<vmem>>, %arg6: memref<1x1xf32, #tpu.memory_space<vmem>>) attributes {dimension_semantics = [#tpu.dimension_semantics<arbitrary>], iteration_bounds = array<i64: 1>, scalar_prefetch = 0 : i64, scratch_operands = 0 : i64, tpu.core_type = #tpu.core_type<tc>, window_params = [{pipeline_mode = #tpu.pipeline_mode<synchronous>, transform_indices = @transform_0, window_bounds = array<i64: 2, 32, 1024>}, {pipeline_mode = #tpu.pipeline_mode<synchronous>, transform_indices = @transform_1, window_bounds = array<i64: 32, 32>}, {pipeline_mode = #tpu.pipeline_mode<synchronous>, transform_indices = @transform_2, window_bounds = array<i64: 32, 5>}, {pipeline_mode = #tpu.pipeline_mode<synchronous>, transform_indices = @transform_3, window_bounds = array<i64: 1, 5>}, {pipeline_mode = #tpu.pipeline_mode<synchronous>, transform_indices = @transform_4, window_bounds = array<i64: 2, 5>}, {pipeline_mode = #tpu.pipeline_mode<synchronous>, transform_indices = @transform_5, window_bounds = array<i64: 1, 1>}]} {
    %c0 = arith.constant 0 : index
    %c0_0 = arith.constant 0 : index
    %c0_1 = arith.constant 0 : index
    %0 = vector.load %arg1[%c0, %c0_0, %c0_1] : memref<2x32x1024xf32, #tpu.memory_space<vmem>>, vector<2x32x1024xf32>
    %cst = arith.constant dense<0.000000e+00> : vector<2x32xf32>
    %1 = vector.multi_reduction <add>, %0, %cst [2] : vector<2x32x1024xf32> to vector<2x32xf32>
    %cst_2 = arith.constant 9.765625E-4 : f32
    %2 = vector.broadcast %cst_2 : f32 to vector<2x32xf32>
    %3 = arith.mulf %1, %2 : vector<2x32xf32>
    %c0_3 = arith.constant 0 : index
    %c0_4 = arith.constant 0 : index
    %4 = vector.load %arg2[%c0_3, %c0_4] : memref<32x32xf32, #tpu.memory_space<vmem>>, vector<32x32xf32>
    %cst_5 = arith.constant dense<0.000000e+00> : vector<2x32xf32>
    %5 = tpu.matmul %3, %4, %cst_5 {dimension_numbers = #tpu.dot_dimension_numbers<[1], [0], [0], [1], [0, 0, 1, 1], [], []>} : vector<2x32xf32>, vector<32x32xf32>, vector<2x32xf32> -> vector<2x32xf32>
    %6 = arith.mulf %5, %5 : vector<2x32xf32>
    %7 = vector.shape_cast %6 : vector<2x32xf32> to vector<1x2x32xf32>
    %cst_6 = arith.constant dense<0.000000e+00> : vector<1xf32>
    %8 = vector.multi_reduction <add>, %7, %cst_6 [1, 2] : vector<1x2x32xf32> to vector<1xf32>
    %9 = vector.shape_cast %8 : vector<1xf32> to vector<1x1x1xf32>
    %10 = vector.extract %9[0, 0, 0] : f32 from vector<1x1x1xf32>
    %11 = vector.broadcast %10 : f32 to vector<1x1xf32>
    %c0_7 = arith.constant 0 : index
    %c0_8 = arith.constant 0 : index
    %12 = vector.load %arg6[%c0_7, %c0_8] : memref<1x1xf32, #tpu.memory_space<vmem>>, vector<1x1xf32>
    tpu.vector_store %arg6[%c0_7, %c0_8], %11 {strides = array<i32>} : memref<1x1xf32, #tpu.memory_space<vmem>>, vector<1x1xf32>,
    %c0_9 = arith.constant 0 : index
    %c0_10 = arith.constant 0 : index
    %13 = vector.load %arg3[%c0_9, %c0_10] : memref<32x5xf32, #tpu.memory_space<vmem>>, vector<32x5xf32>
    %cst_11 = arith.constant dense<0.000000e+00> : vector<2x5xf32>
    %14 = tpu.matmul %5, %13, %cst_11 {dimension_numbers = #tpu.dot_dimension_numbers<[1], [0], [0], [1], [0, 0, 1, 1], [], []>} : vector<2x32xf32>, vector<32x5xf32>, vector<2x5xf32> -> vector<2x5xf32>
    %c0_12 = arith.constant 0 : index
    %c0_13 = arith.constant 0 : index
    %15 = vector.load %arg4[%c0_12, %c0_13] : memref<1x5xf32, #tpu.memory_space<vmem>>, vector<1x5xf32>
    %16 = vector.broadcast %15 : vector<1x5xf32> to vector<2x5xf32>
    %17 = arith.addf %14, %16 : vector<2x5xf32>
    %c0_14 = arith.constant 0 : index
    %c0_15 = arith.constant 0 : index
    %18 = vector.load %arg5[%c0_14, %c0_15] : memref<2x5xf32, #tpu.memory_space<vmem>>, vector<2x5xf32>
    tpu.vector_store %arg5[%c0_14, %c0_15], %17 {strides = array<i32>} : memref<2x5xf32, #tpu.memory_space<vmem>>, vector<2x5xf32>,
    return
  }
  func.func @transform_0(%arg0: i32) -> (i32, i32, i32) {
    %c0_i32 = arith.constant 0 : i32
    %c0_i32_0 = arith.constant 0 : i32
    %c0_i32_1 = arith.constant 0 : i32
    %c0_i32_2 = arith.constant 0 : i32
    return %c0_i32, %c0_i32_0, %c0_i32_1 : i32, i32, i32
  }
  func.func @transform_1(%arg0: i32) -> (i32, i32) {
    %c0_i32 = arith.constant 0 : i32
    %c0_i32_0 = arith.constant 0 : i32
    %c0_i32_1 = arith.constant 0 : i32
    return %c0_i32, %c0_i32_0 : i32, i32
  }
  func.func @transform_2(%arg0: i32) -> (i32, i32) {
    %c0_i32 = arith.constant 0 : i32
    %c0_i32_0 = arith.constant 0 : i32
    %c0_i32_1 = arith.constant 0 : i32
    return %c0_i32, %c0_i32_0 : i32, i32
  }
  func.func @transform_3(%arg0: i32) -> (i32, i32) {
    %c0_i32 = arith.constant 0 : i32
    %c0_i32_0 = arith.constant 0 : i32
    %c0_i32_1 = arith.constant 0 : i32
    return %c0_i32, %c0_i32_0 : i32, i32
  }
  func.func @transform_4(%arg0: i32) -> (i32, i32) {
    %c0_i32 = arith.constant 0 : i32
    %c0_i32_0 = arith.constant 0 : i32
    %c0_i32_1 = arith.constant 0 : i32
    return %c0_i32, %c0_i32_0 : i32, i32
  }
  func.func @transform_5(%arg0: i32) -> (i32, i32) {
    %c0_i32 = arith.constant 0 : i32
    %c0_i32_0 = arith.constant 0 : i32
    %c0_i32_1 = arith.constant 0 : i32
    return %c0_i32, %c0_i32_0 : i32, i32
  }
}

</mosaic_0001>

<bundles_post_ra>
// kernel: tpu_custom_call.1
= control target key start
LH: loop header
LB: loop body
LE: loop exit
PB: predicated region body
PF: predicated region fallthrough
CT: control target
= control target key end

     0   :  { %11 = vsyncpa [#allocation3], 0  ;;  %s672_s0 = inlined_call_operand.hbm [shape: f32[2,32,1024], index: 0, kind: input, shape index: {}]   ;;  %s673_s1 = inlined_call_operand.vmem [shape: f32[32,32], index: 1, kind: input, shape index: {}]   ;;  %s674_s2 = inlined_call_operand.vmem [shape: f32[32,5], index: 2, kind: input, shape index: {}]   ;;  %s675_s3 = inlined_call_operand.vmem [shape: f32[1,5], index: 3, kind: input, shape index: {}]   ;;  %s676_s4 = inlined_call_operand.hbm [shape: f32[2,5], index: 4, kind: output, shape index: {0}]   ;;  %s677_s5 = inlined_call_operand.hbm [shape: f32[1,1], index: 5, kind: output, shape index: {1}]  }
   0x1   :  { %12 = vsyncpa [#allocation4], 0 }
   0x2   :  { %13 = vsyncpa [#allocation7], 0  ;;  %s571_s18 = smov [#allocation2]   ;;  %s499_s22 = scalar_lea.hbm %s672_s0, 8192 }
   0x3   :  { %s19_s19 = sshll.u32 %s571_s18, 4  ;;  %p500_p0 = scmp.ne.s32.totalorder %s672_s0, %s499_s22  ;;  %s20_s19 = int_to_ptr.vmem [resolvable:$true] %s19_s19 }
   0x4   :  { %p503_p1 = scmp.lt.u32.totalorder %s499_s22, %s672_s0 }
   0x6   :  { %p505_p2 = pnand %p503_p1, %p500_p0 }
   0x8   :  { %508 = shalt.err (!%p505_p2)
}
   0x9   :  { %s509_s27 = scalar_lea.vmem %s20_s19, 8192  ;;  %p514_p4 = scmp.lt.s32.totalorder %s20_s19, %s20_s19 }
   0xa   :  { %p510_p3 = scmp.ne.s32.totalorder %s20_s19, %s509_s27  ;;  %p515_p5 = scmp.lt.s32.totalorder %s509_s27, %s509_s27 }
   0xc   :  { %p516_p6 = por %p515_p5, %p514_p4 }
   0xe   :  { %p517_p7 = pnand %p516_p6, %p510_p3 }
  0x10   :  { %520 = shalt.err (!%p517_p7)
}
  0x11   :  { %s572_s28 = smov 1024   ;;  %s573_s29 = smov 64  }
  0x12   :  { %25 = dma.hbm_to_vmem [thread:$0]  %s672_s0, 8192, %s20_s19, [#allocation3], %s572_s28, %s572_s28, %s573_s29  }
  0x13   :  { %565 = dma.done.wait [#allocation3], 8192  }
  0x14   :  { %566 = vsyncadd [#allocation3], 4294959104  ;;  %v67_v0 = vld [vmem:[#allocation2 + $0x100] sm:$0xff]  ;;  %v68_v1 = vld [vmem:[#allocation2 + $0x108] sm:$0xff]  ;;  %vm575_vm0 = vmmov 0   ;;  %vm202_vm1 = vcmask 130112  }
  0x15   :  { %v69_v2 = vld [vmem:[#allocation2 + $0x110] sm:$0xff]  ;;  %v135_v3 = vadd.f32 %v68_v1, %v67_v0  ;;  %v70_v4 = vld [vmem:[#allocation2 + $0x118] sm:$0xff]  ;;  %v35_v5 = vld [vmem:[#allocation2] sm:$0xff]  ;;  %vm209_vm2 = vcmask 195712   ;;  %vm216_vm3 = vcmask 261312   ;;  %vm237_vm4 = vcmask 1041409  }
  0x16   :  { %v36_v7 = vld [vmem:[#allocation2 + $0x8] sm:$0xff]  ;;  %v37_v8 = vld [vmem:[#allocation2 + $0x10] sm:$0xff]  ;;  %v71_v9 = vld [vmem:[#allocation2 + $0x120] sm:$0xff]  ;;  %vm239_vm5 = vcmask 261120   ;;  %vm313_vm6 = vcmask 254976   ;;  %vm325_vm7 = vcmask 0  }
  0x17   :  { %v136_v6 = vadd.f32 %v135_v3, %v69_v2  ;;  %v99_v10 = vadd.f32 %v36_v7, %v35_v5  ;;  %v38_v12 = vld [vmem:[#allocation2 + $0x18] sm:$0xff]  ;;  %v75_v13 = vld [vmem:[#allocation2 + $0x140] sm:$0xff]  ;;  %v76_v14 = vld [vmem:[#allocation2 + $0x148] sm:$0xff]  ;;  %s578_s23 = smov [#allocation5]  }
  0x18   :  { %v72_v15 = vld [vmem:[#allocation2 + $0x128] sm:$0xff]  ;;  %v77_v17 = vld [vmem:[#allocation2 + $0x150] sm:$0xff]  ;;  %v144_v18 = vadd.f32 %v76_v14, %v75_v13  ;;  %v39_v21 = vld [vmem:[#allocation2 + $0x20] sm:$0xff]  ;;  %s419_s24 = sshll.u32 %s578_s23, 4  ;;  %s420_s24 = int_to_ptr.vmem [resolvable:$true] %s419_s24 }
  0x19   :  { %v137_v11 = vadd.f32 %v136_v6, %v70_v4  ;;  %v100_v16 = vadd.f32 %v99_v10, %v37_v8  ;;  %v73_v19 = vld [vmem:[#allocation2 + $0x130] sm:$0xff]  ;;  %v78_v22 = vld [vmem:[#allocation2 + $0x158] sm:$0xff]  ;;  %v43_v25 = vld [vmem:[#allocation2 + $0x40] sm:$0xff] }
  0x1a   :  { %v145_v24 = vadd.f32 %v144_v18, %v77_v17  ;;  %v44_v26 = vld [vmem:[#allocation2 + $0x48] sm:$0xff]  ;;  %v45_v27 = vld [vmem:[#allocation2 + $0x50] sm:$0xff]  ;;  %v74_v28 = vld [vmem:[#allocation2 + $0x138] sm:$0xff] }
  0x1b   :  { %v138_v20 = vadd.f32 %v137_v11, %v71_v9  ;;  %v101_v23 = vadd.f32 %v100_v16, %v38_v12  ;;  %v40_v30 = vld [vmem:[#allocation2 + $0x28] sm:$0xff]  ;;  %v79_v31 = vld [vmem:[#allocation2 + $0x160] sm:$0xff]  ;;  %v108_v32 = vadd.f32 %v44_v26, %v43_v25  ;;  %v41_v33 = vld [vmem:[#allocation2 + $0x30] sm:$0xff] }
  0x1c   :  { %v146_v35 = vadd.f32 %v145_v24, %v78_v22  ;;  %v46_v36 = vld [vmem:[#allocation2 + $0x58] sm:$0xff]  ;;  %v83_v37 = vld [vmem:[#allocation2 + $0x180] sm:$0xff]  ;;  %v80_v39 = vld [vmem:[#allocation2 + $0x168] sm:$0xff] }
  0x1d   :  { %v139_v29 = vadd.f32 %v138_v20, %v72_v15  ;;  %v102_v34 = vadd.f32 %v101_v23, %v39_v21  ;;  %v109_v40 = vadd.f32 %v108_v32, %v45_v27  ;;  %v84_v41 = vld [vmem:[#allocation2 + $0x188] sm:$0xff]  ;;  %v85_v42 = vld [vmem:[#allocation2 + $0x190] sm:$0xff]  ;;  %v42_v43 = vld [vmem:[#allocation2 + $0x38] sm:$0xff] }
  0x1e   :  { %v81_v45 = vld [vmem:[#allocation2 + $0x170] sm:$0xff]  ;;  %v147_v46 = vadd.f32 %v146_v35, %v79_v31  ;;  %v47_v47 = vld [vmem:[#allocation2 + $0x60] sm:$0xff]  ;;  %v153_v48 = vadd.f32 %v84_v41, %v83_v37  ;;  %v86_v51 = vld [vmem:[#allocation2 + $0x198] sm:$0xff] }
  0x1f   :  { %v140_v38 = vadd.f32 %v139_v29, %v73_v19  ;;  %v103_v44 = vadd.f32 %v102_v34, %v40_v30  ;;  %v110_v50 = vadd.f32 %v109_v40, %v46_v36  ;;  %v51_v52 = vld [vmem:[#allocation2 + $0x80] sm:$0xff]  ;;  %v52_v53 = vld [vmem:[#allocation2 + $0x88] sm:$0xff]  ;;  %v82_v55 = vld [vmem:[#allocation2 + $0x178] sm:$0xff] }
  0x20   :  { %v148_v56 = vadd.f32 %v147_v46, %v80_v39  ;;  %v48_v57 = vld [vmem:[#allocation2 + $0x68] sm:$0xff]  ;;  %v154_v58 = vadd.f32 %v153_v48, %v85_v42  ;;  %v53_v59 = vld [vmem:[#allocation2 + $0x90] sm:$0xff]  ;;  %v117_v60 = vadd.f32 %v52_v53, %v51_v52  ;;  %v87_v63 = vld [vmem:[#allocation2 + $0x1a0] sm:$0xff] }
  0x21   :  { %v141_v49 = vadd.f32 %v140_v38, %v74_v28  ;;  %v104_v54 = vadd.f32 %v103_v44, %v41_v33  ;;  %v49_v61 = vld [vmem:[#allocation2 + $0x70] sm:$0xff]  ;;  %v111_v62 = vadd.f32 %v110_v50, %v47_v47  ;;  %v54_v0 = vld [vmem:[#allocation2 + $0x98] sm:$0xff]  ;;  %v91_v5 = vld [vmem:[#allocation2 + $0x1c0] sm:$0xff] }
  0x22   :  { %v149_v2 = vadd.f32 %v148_v56, %v81_v45  ;;  %v155_v3 = vadd.f32 %v154_v58, %v86_v51  ;;  %v118_v4 = vadd.f32 %v117_v60, %v53_v59  ;;  %v92_v6 = vld [vmem:[#allocation2 + $0x1c8] sm:$0xff]  ;;  %v93_v7 = vld [vmem:[#allocation2 + $0x1d0] sm:$0xff]  ;;  %v50_v8 = vld [vmem:[#allocation2 + $0x78] sm:$0xff]  ;;  %v574_v59 = vmov 0.0|0.0  }
  0x23   :  { %142 = vadd.xlane.f32.xlu1 %v141_v49  ;;  %v105_v1 = vadd.f32 %v104_v54, %v42_v43  ;;  %v112_v9 = vadd.f32 %v111_v62, %v48_v57  ;;  %v88_v10 = vld [vmem:[#allocation2 + $0x1a8] sm:$0xff]  ;;  %v55_v11 = vld [vmem:[#allocation2 + $0xa0] sm:$0xff]  ;;  %v162_v12 = vadd.f32 %v92_v6, %v91_v5  ;;  %v89_v14 = vld [vmem:[#allocation2 + $0x1b0] sm:$0xff]  ;;  %477 = vmatprep.subr.bf16.mxu0 %v574_v59 }
  0x24   :  { %v150_v13 = vadd.f32 %v149_v2, %v82_v55  ;;  %v156_v15 = vadd.f32 %v155_v3, %v87_v63  ;;  %v119_v16 = vadd.f32 %v118_v4, %v54_v0  ;;  %v94_v17 = vld [vmem:[#allocation2 + $0x1d8] sm:$0xff]  ;;  %v59_v18 = vld [vmem:[#allocation2 + $0xc0] sm:$0xff]  ;;  %v56_v20 = vld [vmem:[#allocation2 + $0xa8] sm:$0xff]  ;;  %483 = vmatprep.subr.bf16.mxu1 %v574_v59  ;;  %v576_v63 = vmov 0.0  }
  0x25   :  { %106 = vadd.xlane.f32.xlu0 %v105_v1  ;;  %v113_v19 = vadd.f32 %v112_v9, %v49_v61  ;;  %v163_v21 = vadd.f32 %v162_v12, %v93_v7  ;;  %v60_v22 = vld [vmem:[#allocation2 + $0xc8] sm:$0xff]  ;;  %v61_v23 = vld [vmem:[#allocation2 + $0xd0] sm:$0xff]  ;;  %v95_v26 = vld [vmem:[#allocation2 + $0x1e0] sm:$0xff]  ;;  %463 = vmatprep.mubr.msk.f32.mxu0 %vm575_vm0, %v576_v63  ;;  %v191_v7 = vlaneseq }
  0x26   :  { %v157_v24 = vadd.f32 %v156_v15, %v88_v10  ;;  %v120_v25 = vadd.f32 %v119_v16, %v55_v11  ;;  %v126_v27 = vadd.f32 %v60_v22, %v59_v18  ;;  %v90_v29 = vld [vmem:[#allocation2 + $0x1b8] sm:$0xff]  ;;  %v57_v30 = vld [vmem:[#allocation2 + $0xb0] sm:$0xff]  ;;  %v96_v35 = vld [vmem:[#allocation2 + $0x1e8] sm:$0xff]  ;;  %474 = vmatprep.mubr.msk.f32.mxu1 %vm575_vm0, %v576_v63 }
  0x27   :  { %151 = vadd.xlane.f32.xlu1 %v150_v13  ;;  %v114_v28 = vadd.f32 %v113_v19, %v50_v8  ;;  %v164_v31 = vadd.f32 %v163_v21, %v94_v17  ;;  %v62_v32 = vld [vmem:[#allocation2 + $0xd8] sm:$0xff]  ;;  %v63_v39 = vld [vmem:[#allocation2 + $0xe0] sm:$0xff]  ;;  %v97_v42 = vld [vmem:[#allocation2 + $0x1f0] sm:$0xff]  ;;  %v192_v10 = vand.u32 127, %v191_v7 }
  0x28   :  { %v158_v33 = vadd.f32 %v157_v24, %v89_v14  ;;  %v121_v34 = vadd.f32 %v120_v25, %v56_v20  ;;  %v127_v36 = vadd.f32 %v126_v27, %v61_v23  ;;  %v58_v37 = vld [vmem:[#allocation2 + $0xb8] sm:$0xff]  ;;  %v64_v45 = vld [vmem:[#allocation2 + $0xe8] sm:$0xff]  ;;  %v65_v50 = vld [vmem:[#allocation2 + $0xf0] sm:$0xff]  ;;  %v194_v14 = vshrl.u32 %v191_v7, 7 }
  0x29   :  { %115 = vadd.xlane.f32.xlu0 %v114_v28  ;;  %v165_v38 = vadd.f32 %v164_v31, %v95_v26  ;;  %v98_v47 = vld [vmem:[#allocation2 + $0x1f8] sm:$0xff]  ;;  %v179_v56 = vld [vmem:[%s673_s1] sm:$0xff]  ;;  %v180_v57 = vld [vmem:[%s673_s1 + $0x8] sm:$0xff]  ;;  %v197_v11 = vadd.s32 4294967288, %v192_v10  ;;  %v204_v13 = vadd.s32 4294967280, %v192_v10  ;;  %v211_v16 = vadd.s32 4294967272, %v192_v10 }
  0x2a   :  { %v159_v40 = vadd.f32 %v158_v33, %v90_v29  ;;  %v122_v41 = vadd.f32 %v121_v34, %v57_v30  ;;  %v128_v43 = vadd.f32 %v127_v36, %v62_v32  ;;  %v66_v53 = vld [vmem:[#allocation2 + $0xf8] sm:$0xff]  ;;  %v478_v58 = vpack.c.bf16 %v180_v57, %v179_v56  ;;  %v181_v60 = vld [vmem:[%s673_s1 + $0x10] sm:$0xff]  ;;  %v327_v0 = vld [vmem:[%s674_s2] sm:$0xff] }
  0x2b   :  { %v166_v44 = vadd.f32 %v165_v38, %v96_v35  ;;  %v182_v61 = vld [vmem:[%s673_s1 + $0x18] sm:$0xff]  ;;  %v328_v1 = vld [vmem:[%s674_s2 + $0x8] sm:$0xff]  ;;  %v329_v2 = vld [vmem:[%s674_s2 + $0x10] sm:$0xff]  ;;  %v200_v17 = vsub.s32 %v197_v11, %v194_v14  ;;  %v207_v19 = vsub.s32 %v204_v13, %v194_v14  ;;  %v195_v22 = vsub.s32 %v192_v10, %v194_v14 }
  0x2c   :  { %160 = vadd.xlane.f32.xlu1 %v159_v40  ;;  %v123_v46 = vadd.f32 %v122_v41, %v58_v37  ;;  %v129_v48 = vadd.f32 %v128_v43, %v63_v39  ;;  %479 = vmatpush3.bf16.msra.mxu0 %v478_v58  ;;  %v481_v62 = vpack.c.bf16 %v182_v61, %v181_v60  ;;  %v330_v4 = vld [vmem:[%s674_s2 + $0x18] sm:$0xff]  ;;  %s577_s2 = smov [#allocation6]  }
  0x2d   :  { %v167_v49 = vadd.f32 %v166_v44, %v97_v42  ;;  %480 = vmatprep.subr.bf16.mxu0 %v574_v59  ;;  %v484_v3 = vpack.c.bf16 %v328_v1, %v327_v0  ;;  %v487_v5 = vpack.c.bf16 %v330_v4, %v329_v2  ;;  %v214_v26 = vsub.s32 %v211_v16, %v194_v14  ;;  %s429_s21 = sshll.u32 %s577_s2, 4  ;;  %s430_s21 = int_to_ptr.vmem [resolvable:$true] %s429_s21 }
  0x2e   :  { %124 = vadd.xlane.f32.xlu0 %v123_v46  ;;  %v130_v51 = vadd.f32 %v129_v48, %v64_v45  ;;  %s521_s27 = scalar_lea.vmem %s430_s21, 16  ;;  %s525_s28 = scalar_lea.vmem %s430_s21, 32 }
  0x2f   :  { %v168_v52 = vadd.f32 %v167_v49, %v98_v47  ;;  %485 = vmatpush3.bf16.msra.mxu1 %v484_v3  ;;  %p522_p8 = scmp.ne.s32.totalorder %s430_s21, %s521_s27  ;;  %p526_p9 = scmp.lt.s32.totalorder %s430_s21, %s430_s21 }
  0x30   :  { %v131_v54 = vadd.f32 %v130_v51, %v65_v50  ;;  %482 = vmatpush3.bf16.msra.mxu0 %v481_v62  ;;  %486 = vmatprep.subr.bf16.mxu1 %v574_v59  ;;  %v443_v59 = vld [vmem:[%s675_s3] ss:$0 sm:$0xff]  ;;  %p527_p10 = scmp.lt.s32.totalorder %s525_s28, %s521_s27 }
  0x31   :  { %169 = vadd.xlane.f32.xlu1 %v168_v52 }
  0x32   :  { %v132_v55 = vadd.f32 %v131_v54, %v66_v53  ;;  %p528_p11 = por %p527_p10, %p526_p9 }
  0x33   :  { %488 = vmatpush3.bf16.msra.mxu1 %v487_v5 }
  0x34   :  { %133 = vadd.xlane.f32.xlu0 %v132_v55  ;;  %p529_p12 = pnand %p528_p11, %p522_p8 }
  0xb0   :  { %v143_v6 = vpop.xlane.xlu1 %142 }
  0xb1   :  { %v175_v23 = vmul.f32 0.0009765625, %v143_v6 }
  0xb2   :  { %v107_v8 = vpop.xlane.xlu0 %106 }
  0xb3   :  { %v171_v27 = vmul.f32 0.0009765625, %v107_v8  ;;  %v221_v32 = vrot.slane %v175_v23, %v195_v22 }
  0xb4   :  { %v152_v9 = vpop.xlane.xlu1 %151 }
  0xb5   :  { %v176_v18 = vmul.f32 0.0009765625, %v152_v9  ;;  %v196_v37 = vrot.slane %v171_v27, %v195_v22 }
  0xb6   :  { %v116_v12 = vpop.xlane.xlu0 %115 }
  0xb7   :  { %v172_v24 = vmul.f32 0.0009765625, %v116_v12  ;;  %v225_v28 = vrot.slane %v176_v18, %v200_v17 }
  0xb9   :  { %v161_v15 = vpop.xlane.xlu1 %160  ;;  %v201_v33 = vrot.slane %v172_v24, %v200_v17  ;;  %v226_v38 = vsel %vm202_vm1, %v225_v28, %v221_v32 }
  0xba   :  { %v177_v20 = vmul.f32 0.0009765625, %v161_v15 }
  0xbb   :  { %v125_v21 = vpop.xlane.xlu0 %124  ;;  %v203_v41 = vsel %vm202_vm1, %v201_v33, %v196_v37 }
  0xbc   :  { %v173_v25 = vmul.f32 0.0009765625, %v125_v21  ;;  %v230_v30 = vrot.slane %v177_v20, %v207_v19 }
  0xbe   :  { %v170_v29 = vpop.xlane.xlu1 %169  ;;  %v208_v34 = vrot.slane %v173_v25, %v207_v19  ;;  %v231_v40 = vsel %vm209_vm2, %v230_v30, %v226_v38 }
  0xbf   :  { %v178_v31 = vmul.f32 0.0009765625, %v170_v29 }
  0xc0   :  { %v210_v44 = vsel %vm209_vm2, %v208_v34, %v203_v41 }
  0xc1   :  { %v235_v35 = vrot.slane %v178_v31, %v214_v26  ;;  %v134_v36 = vpop.xlane.xlu0 %133 }
  0xc2   :  { %v174_v39 = vmul.f32 0.0009765625, %v134_v36 }
  0xc3   :  { %v236_v43 = vsel %vm216_vm3, %v235_v35, %v231_v40 }
  0xc4   :  { %v215_v42 = vrot.slane %v174_v39, %v214_v26 }
  0xc6   :  { %v217_v45 = vsel %vm216_vm3, %v215_v42, %v210_v44 }
  0xc7   :  { %v238_v46 = vsel %vm237_vm4, %v236_v43, %v217_v45 }
  0xc8   :  { %464 = vmatmul.mubr.msk.f32.vlgmr.msra.gmra.mrb[0].mxu0 %vm239_vm5, %v238_v46 }
 0x19b   :  { %v308_v47 = vpop.f32.mrb[0].mxu0 }
 0x19c   :  { %v312_v48 = vmul.f32 %v308_v47, %v308_v47  ;;  %v465_v49 = vpop.f32.mrb[1].mxu0  ;;  %475 = vmatmul.mubr.msk.f32.vlgmr.msra.gmra.mrb[0].mxu1 %vm239_vm5, %v308_v47 }
 0x19e   :  { %v314_v50 = vsel %vm313_vm6, %v312_v48, 0.0 }
 0x19f   :  { %315 = vadd.xlane.f32.xlu0 %v314_v50 }
 0x22c   :  { %v316_v51 = vpop.xlane.xlu0 %315 }
 0x22d   :  { %v317_v52 = vrot.slane %v316_v51, 4 }
 0x22f   :  { %v318_v53 = vadd.f32 %v317_v52, %v316_v51 }
 0x231   :  { %v319_v54 = vrot.slane %v318_v53, 2 }
 0x233   :  { %v320_v55 = vadd.f32 %v319_v54, %v318_v53 }
 0x235   :  { %v321_v56 = vrot.slane %v320_v55, 1 }
 0x237   :  { %v322_v57 = vadd.f32 %v321_v56, %v320_v55 }
 0x239   :  { %489 = vpush %v322_v57 }
 0x26a   :  { %s490_s22 = spop %489 }
 0x26b   :  { %v324_v58 = vstv %s490_s22 }
 0x26c   :  { %326 = vst.msk [vmem:[#allocation6] sm:$0x1] %vm325_vm7, %v324_v58 }
 0x26d   :  { %532 = shalt.err (!%p529_p12)
}
 0x26e   :  { %s533_s6 = scalar_lea.hbm %s677_s5, 16 }
 0x26f   :  { %p534_p13 = scmp.ne.s32.totalorder %s677_s5, %s533_s6  ;;  %p537_p0 = scmp.lt.u32.totalorder %s533_s6, %s677_s5 }
 0x271   :  { %p539_p1 = pnand %p537_p0, %p534_p13 }
 0x273   :  { %542 = shalt.err (!%p539_p1)
}
 0x274   :  { %432 = dma.vmem_to_hbm [thread:$0]  %s430_s21, 16, %s677_s5, [#allocation7]   ;;  %v407_v60 = vpop.f32.mrb[0].mxu1  ;;  %vm411_vm8 = vcmask 33792  }
 0x275   :  { %v408_v61 = vadd.f32 %v443_v59, %v407_v60  ;;  %v476_v62 = vpop.f32.mrb[1].mxu1  ;;  %s543_s11 = scalar_lea.vmem %s420_s24, 32  ;;  %p548_p3 = scmp.lt.s32.totalorder %s420_s24, %s420_s24 }
 0x276   :  { %p544_p2 = scmp.ne.s32.totalorder %s420_s24, %s543_s11  ;;  %p549_p4 = scmp.lt.s32.totalorder %s543_s11, %s543_s11 }
 0x277   :  { %412 = vst.msk [vmem:[#allocation5] sm:$0x3] %vm411_vm8, %v408_v61 }
 0x278   :  { %p550_p5 = por %p549_p4, %p548_p3 }
 0x27a   :  { %p551_p6 = pnand %p550_p5, %p544_p2 }
 0x27c   :  { %554 = shalt.err (!%p551_p6)
}
 0x27d   :  { %s555_s14 = scalar_lea.hbm %s676_s4, 32 }
 0x27e   :  { %p556_p7 = scmp.ne.s32.totalorder %s676_s4, %s555_s14  ;;  %p559_p8 = scmp.lt.u32.totalorder %s555_s14, %s676_s4 }
 0x280   :  { %p561_p9 = pnand %p559_p8, %p556_p7 }
 0x282   :  { %564 = shalt.err (!%p561_p9)
}
 0x283   :  { %422 = dma.vmem_to_hbm [thread:$0]  %s420_s24, 32, %s676_s4, [#allocation4]  }
 0x284   :  { %567 = dma.done.wait [#allocation4], 32  }
 0x285   :  { %568 = vsyncadd [#allocation4], 4294967264 }
 0x286   :  { %569 = dma.done.wait [#allocation7], 16  }
 0x287   :  { %570 = vsyncadd [#allocation7], 4294967280 }
 0x288   :  { %439 = vsyncpa [#allocation3], 1 }
 0x289   :  { %440 = vsyncpa [#allocation4], 1 }
 0x28a   :  { %441 = vsyncpa [#allocation7], 1 }

</bundles_post_ra>
